<compile_context>
chip_gen: v7x
topology: tpu7x:2x2x1
jax: 0.10.0
libtpu: 0.0.40
codegen_flags: <defaults>
</compile_context>

<pallas_src>
import jax
import jax.numpy as jnp
from jax.experimental import pallas as pl
from jax.experimental.pallas import tpu as pltpu

# ----------------------------- static config ------------------------------
C = 1.0              # Poincare ball curvature
SQRT_C = float(C) ** 0.5
ETA = 1e-5           # pvae Constants.eta
MIN_NORM = 1e-15     # norm clamp (geoopt convention)
BALL_EPS = 4e-3      # float32 projection epsilon (projection is provably dead code)

B = 2
DATA_SIZE = (4, 16, 16)          # (C, H, W)
D_IN = 4 * 16 * 16               # prod(data_size) = 1024
HIDDEN = 128                     # hidden_dim
NUM_HIDDEN_LAYERS = 2            # 1 input layer + 1 extra hidden layer
COORD_DIM = 8                    # manifold.coord_dim
PRIOR_ISO = False
OUT22 = COORD_DIM if not PRIOR_ISO else 1
TAIL = COORD_DIM + OUT22         # valid tail lanes (mu lanes ++ sigma lanes)
OUT_LANES = 128                  # lane-dense output width (zero-padded tail)
TB_MAX = 1024                    # batch tile for large B (use ~2048 on v7x if desired)


def _round_up(n, m):
    return ((n + m - 1) // m) * m


def _artanh(z):
    z = jnp.clip(z, -1.0 + 1e-7, 1.0 - 1e-7)
    return 0.5 * jnp.log((1.0 + z) / (1.0 - z))


def _softplus(z):
    # matches F.softplus (beta=1) to fp32 precision
    return jnp.logaddexp(z, 0.0)


# ------------------------------- kernel -----------------------------------
def encmob_kernel(x_ref, w0_ref, b0_ref, w1_ref, b1_ref, wcat_ref, bcat_ref, out_ref):
    sqrt_c = jnp.float32(SQRT_C)

    # encoder MLP: bf16 MXU inputs (cast in-kernel), f32 accumulation + element-wise
    xb = x_ref[...].astype(jnp.bfloat16)
    h = jnp.dot(xb, w0_ref[...], preferred_element_type=jnp.float32)
    h = jnp.maximum(h + b0_ref[...], 0.0)
    h = jnp.dot(h.astype(jnp.bfloat16), w1_ref[...],
                preferred_element_type=jnp.float32)
    h = jnp.maximum(h + b1_ref[...], 0.0)

    # fused, lane-dense tail GEMM (128 output lanes):
    #   lanes [:COORD_DIM]      = mobius matvec mv (no bias)
    #   lanes [COORD_DIM:TAIL]  = fc22 pre-activation (bias via bcat)
    #   lanes [TAIL:]           = zero padding (weights/bias are zero)
    tail = jnp.dot(h.astype(jnp.bfloat16), wcat_ref[...],
                   preferred_element_type=jnp.float32) + bcat_ref[...]

    lane = jax.lax.broadcasted_iota(jnp.int32, tail.shape, 1)
    mu_mask = lane < COORD_DIM

    # mobius_matvec + expmap0, algebraically simplified:
    #   r  = ||mv||/||e|| * artanh(sqrt(c)*||e||)
    #   mu = tanh(tanh(r)) * mv / (sqrt(c)*||mv||)
    # (ball projection omitted: ||mu|| <= tanh(1)/sqrt(c) < (1-BALL_EPS)/sqrt(c))
    mv = jnp.where(mu_mask, tail, 0.0)
    ee = jnp.maximum(jnp.sum(h * h, axis=-1, keepdims=True), MIN_NORM * MIN_NORM)
    mm = jnp.maximum(jnp.sum(mv * mv, axis=-1, keepdims=True), MIN_NORM * MIN_NORM)
    inv_e = jax.lax.rsqrt(ee)
    inv_mv = jax.lax.rsqrt(mm)
    e_norm = ee * inv_e           # = ||e||    (mul instead of sqrt)
    mv_norm = mm * inv_mv         # = ||mv||
    r = (mv_norm * inv_e) * _artanh(sqrt_c * e_norm)
    mu_scale = (jnp.tanh(jnp.tanh(r)) / sqrt_c) * inv_mv   # per-row scalar
    mu_full = mu_scale * tail                              # valid on mu lanes
    sigma_full = _softplus(tail) + ETA                     # valid on sigma lanes

    # single unmasked lane-dense store; wrapper slices mu / sigma lanes
    out_ref[...] = jnp.where(mu_mask, mu_full, sigma_full)


# ------------------------------- wrapper -----------------------------------
def encmob_forward(x, params):
    """x: [B, C, H, W] float32 (or bfloat16); returns (mu [B, COORD_DIM], sigma [B, OUT22])."""
    w0, b0, w1, b1, w21, w22, b22 = params
    bx = x.shape[0]
    # flatten data_size dims, row-major (torch .view); no dtype cast -> no extra HBM pass
    x_flat = x.reshape(bx, -1)

    # batch tiling: single full block for small/medium batches (no pad pass),
    # 1024-row tiles (double-buffered, parallel grid axis) for large batches.
    if bx <= TB_MAX:
        tb, bp = bx, bx
    else:
        tb = TB_MAX
        bp = _round_up(bx, tb)
        if bp != bx:
            x_flat = jnp.pad(x_flat, ((0, bp - bx), (0, 0)))

    # VMEM-resident weights: bf16 GEMM operands, f32 biases.
    w0_bf = w0.astype(jnp.bfloat16)
    w1_bf = w1.astype(jnp.bfloat16)
    # fuse fc21 (no bias) + fc22 and zero-pad to 128 lanes for a lane-dense output
    w_cat = jnp.zeros((HIDDEN, OUT_LANES), jnp.bfloat16)
    w_cat = w_cat.at[:, :COORD_DIM].set(w21.astype(jnp.bfloat16))
    w_cat = w_cat.at[:, COORD_DIM:TAIL].set(w22.astype(jnp.bfloat16))
    b_cat = jnp.zeros((1, OUT_LANES), jnp.float32)
    b_cat = b_cat.at[:, COORD_DIM:TAIL].set(b22)

    grid = (bp // tb,)
    const = lambda i: (0, 0)   # weights stay VMEM-resident across batch tiles

    flops = 2 * bp * (D_IN * HIDDEN + HIDDEN * HIDDEN + HIDDEN * OUT_LANES)
    transcendentals = bp * (2 * OUT_LANES + 4)
    bytes_accessed = (x_flat.size * x_flat.dtype.itemsize
                      + w0_bf.size * 2 + w1_bf.size * 2 + w_cat.size * 2
                      + b0.size * 4 + b1.size * 4 + b_cat.size * 4
                      + bp * OUT_LANES * 4)

    out = pl.pallas_call(
        encmob_kernel,
        out_shape=jax.ShapeDtypeStruct((bp, OUT_LANES), jnp.float32),
        grid=grid,
        in_specs=[
            pl.BlockSpec((tb, D_IN), lambda i: (i, 0)),      # x tile per grid step
            pl.BlockSpec((D_IN, HIDDEN), const),             # w0 (bf16)
            pl.BlockSpec((1, HIDDEN), const),                # b0
            pl.BlockSpec((HIDDEN, HIDDEN), const),           # w1 (bf16)
            pl.BlockSpec((1, HIDDEN), const),                # b1
            pl.BlockSpec((HIDDEN, OUT_LANES), const),        # fused/padded tail weight
            pl.BlockSpec((1, OUT_LANES), const),             # fused/padded tail bias
        ],
        out_specs=pl.BlockSpec((tb, OUT_LANES), lambda i: (i, 0)),
        compiler_params=pltpu.CompilerParams(
            dimension_semantics=("parallel",)),
        cost_estimate=pl.CostEstimate(
            flops=flops, transcendentals=transcendentals,
            bytes_accessed=bytes_accessed),
    )(x_flat, w0_bf, b0, w1_bf, b1, w_cat, b_cat)

    mu = out[:bx, :COORD_DIM]
    sigma = out[:bx, COORD_DIM:TAIL]
    return mu, sigma


# ------------------------ pure-JAX references (check) ------------------------
def encmob_reference(x, params, mxu_dtype=jnp.float32):
    """Module semantics. mxu_dtype=bf16 mirrors the kernel's GEMM numerics."""
    w0, b0, w1, b1, w21, w22, b22 = params
    sqrt_c = SQRT_C
    h = x.reshape(x.shape[0], -1).astype(mxu_dtype)
    h = jnp.dot(h, w0.astype(mxu_dtype), preferred_element_type=jnp.float32)
    h = jnp.maximum(h + b0, 0.0)
    h = jnp.dot(h.astype(mxu_dtype), w1.astype(mxu_dtype),
                preferred_element_type=jnp.float32)
    h = jnp.maximum(h + b1, 0.0)
    mv = jnp.dot(h.astype(mxu_dtype), w21.astype(mxu_dtype),
                 preferred_element_type=jnp.float32)
    e_norm = jnp.maximum(jnp.linalg.norm(h, axis=-1, keepdims=True), MIN_NORM)
    mv_norm = jnp.maximum(jnp.linalg.norm(mv, axis=-1, keepdims=True), MIN_NORM)
    mu_pre = (jnp.tanh(mv_norm / e_norm * _artanh(sqrt_c * e_norm))
              * mv / (sqrt_c * mv_norm))
    u_norm = jnp.maximum(jnp.linalg.norm(mu_pre, axis=-1, keepdims=True), MIN_NORM)
    mu = jnp.tanh(sqrt_c * u_norm) * mu_pre / (sqrt_c * u_norm)
    max_norm = (1.0 - BALL_EPS) / sqrt_c
    mu_norm = jnp.maximum(jnp.linalg.norm(mu, axis=-1, keepdims=True), MIN_NORM)
    mu = jnp.where(mu_norm > max_norm, mu * (max_norm / mu_norm), mu)
    s = jnp.dot(h.astype(mxu_dtype), w22.astype(mxu_dtype),
                preferred_element_type=jnp.float32) + b22
    sigma = _softplus(s) + ETA
    return mu, sigma


# --------------------------------- main -------------------------------------
if __name__ == "__main__":
    key = jax.random.PRNGKey(0)
    ks = jax.random.split(key, 8)

    def linear_params(kw, kb, fan_in, fan_out):
        # deterministic init, roughly matching torch.nn.Linear default scale
        bound = 1.0 / jnp.sqrt(jnp.float32(fan_in))
        w = jax.random.uniform(kw, (fan_in, fan_out), jnp.float32, -bound, bound)
        b = jax.random.uniform(kb, (1, fan_out), jnp.float32, -bound, bound)
        return w, b

    w0, b0 = linear_params(ks[0], ks[1], D_IN, HIDDEN)
    w1, b1 = linear_params(ks[2], ks[3], HIDDEN, HIDDEN)
    w21, _ = linear_params(ks[4], ks[4], HIDDEN, COORD_DIM)   # MobiusLayer: no bias
    w22, b22 = linear_params(ks[5], ks[6], HIDDEN, OUT22)
    params = (w0, b0, w1, b1, w21, w22, b22)

    x = jax.random.normal(ks[7], (B,) + DATA_SIZE, jnp.float32)

    mu, sigma = jax.block_until_ready(encmob_forward(x, params))
    assert mu.shape == (B, COORD_DIM) and sigma.shape == (B, OUT22)

    # tight check: reference mirroring the kernel's bf16-GEMM / f32-accum numerics
    mu_m, sigma_m = encmob_reference(x, params, mxu_dtype=jnp.bfloat16)
    assert jnp.allclose(mu, mu_m, rtol=1e-3, atol=1e-5)
    assert jnp.allclose(sigma, sigma_m, rtol=1e-3, atol=1e-5)

    # loose sanity check against full-f32 module semantics (bf16 GEMM input error)
    mu_f, sigma_f = encmob_reference(x, params, mxu_dtype=jnp.float32)
    assert jnp.allclose(mu, mu_f, rtol=5e-2, atol=2e-2)
    assert jnp.allclose(sigma, sigma_f, rtol=5e-2, atol=2e-2)

    print("KERNEL_OK")
</pallas_src>

<mosaic_0001>
module attributes {stable_mosaic.version = 11 : i64} {
  func.func @encmob_kernel(%arg0: i32, %arg1: memref<2x1024xf32, #tpu.memory_space<vmem>>, %arg2: memref<1024x128xbf16, #tpu.memory_space<vmem>>, %arg3: memref<1x128xf32, #tpu.memory_space<vmem>>, %arg4: memref<128x128xbf16, #tpu.memory_space<vmem>>, %arg5: memref<1x128xf32, #tpu.memory_space<vmem>>, %arg6: memref<128x128xbf16, #tpu.memory_space<vmem>>, %arg7: memref<1x128xf32, #tpu.memory_space<vmem>>, %arg8: memref<2x128xf32, #tpu.memory_space<vmem>>) attributes {dimension_semantics = [#tpu.dimension_semantics<parallel>], iteration_bounds = array<i64: 1>, scalar_prefetch = 0 : i64, scratch_operands = 0 : i64, tpu.core_type = #tpu.core_type<tc>, window_params = [{transform_indices = @transform_0, window_bounds = array<i64: 2, 1024>}, {pipeline_mode = #tpu.pipeline_mode<synchronous>, transform_indices = @transform_1, window_bounds = array<i64: 1024, 128>}, {pipeline_mode = #tpu.pipeline_mode<synchronous>, transform_indices = @transform_2, window_bounds = array<i64: 1, 128>}, {pipeline_mode = #tpu.pipeline_mode<synchronous>, transform_indices = @transform_3, window_bounds = array<i64: 128, 128>}, {pipeline_mode = #tpu.pipeline_mode<synchronous>, transform_indices = @transform_4, window_bounds = array<i64: 1, 128>}, {pipeline_mode = #tpu.pipeline_mode<synchronous>, transform_indices = @transform_5, window_bounds = array<i64: 128, 128>}, {pipeline_mode = #tpu.pipeline_mode<synchronous>, transform_indices = @transform_6, window_bounds = array<i64: 1, 128>}, {transform_indices = @transform_7, window_bounds = array<i64: 2, 128>}]} {
    %c0 = arith.constant 0 : index
    %c0_0 = arith.constant 0 : index
    %0 = vector.load %arg1[%c0, %c0_0] : memref<2x1024xf32, #tpu.memory_space<vmem>>, vector<2x1024xf32>
    %1 = arith.truncf %0 : vector<2x1024xf32> to vector<2x1024xbf16>
    %c0_1 = arith.constant 0 : index
    %c0_2 = arith.constant 0 : index
    %2 = vector.load %arg2[%c0_1, %c0_2] : memref<1024x128xbf16, #tpu.memory_space<vmem>>, vector<1024x128xbf16>
    %cst = arith.constant dense<0.000000e+00> : vector<2x128xf32>
    %3 = tpu.matmul %1, %2, %cst {dimension_numbers = #tpu.dot_dimension_numbers<[1], [0], [0], [1], [0, 0, 1, 1], [], []>} : vector<2x1024xbf16>, vector<1024x128xbf16>, vector<2x128xf32> -> vector<2x128xf32>
    %c0_3 = arith.constant 0 : index
    %c0_4 = arith.constant 0 : index
    %4 = vector.load %arg3[%c0_3, %c0_4] : memref<1x128xf32, #tpu.memory_space<vmem>>, vector<1x128xf32>
    %5 = vector.broadcast %4 : vector<1x128xf32> to vector<2x128xf32>
    %6 = arith.addf %3, %5 : vector<2x128xf32>
    %cst_5 = arith.constant 0.000000e+00 : f32
    %7 = vector.broadcast %cst_5 : f32 to vector<2x128xf32>
    %8 = arith.maximumf %6, %7 : vector<2x128xf32>
    %9 = arith.truncf %8 : vector<2x128xf32> to vector<2x128xbf16>
    %c0_6 = arith.constant 0 : index
    %c0_7 = arith.constant 0 : index
    %10 = vector.load %arg4[%c0_6, %c0_7] : memref<128x128xbf16, #tpu.memory_space<vmem>>, vector<128x128xbf16>
    %cst_8 = arith.constant dense<0.000000e+00> : vector<2x128xf32>
    %11 = tpu.matmul %9, %10, %cst_8 {dimension_numbers = #tpu.dot_dimension_numbers<[1], [0], [0], [1], [0, 0, 1, 1], [], []>} : vector<2x128xbf16>, vector<128x128xbf16>, vector<2x128xf32> -> vector<2x128xf32>
    %c0_9 = arith.constant 0 : index
    %c0_10 = arith.constant 0 : index
    %12 = vector.load %arg5[%c0_9, %c0_10] : memref<1x128xf32, #tpu.memory_space<vmem>>, vector<1x128xf32>
    %13 = vector.broadcast %12 : vector<1x128xf32> to vector<2x128xf32>
    %14 = arith.addf %11, %13 : vector<2x128xf32>
    %cst_11 = arith.constant 0.000000e+00 : f32
    %15 = vector.broadcast %cst_11 : f32 to vector<2x128xf32>
    %16 = arith.maximumf %14, %15 : vector<2x128xf32>
    %17 = arith.truncf %16 : vector<2x128xf32> to vector<2x128xbf16>
    %c0_12 = arith.constant 0 : index
    %c0_13 = arith.constant 0 : index
    %18 = vector.load %arg6[%c0_12, %c0_13] : memref<128x128xbf16, #tpu.memory_space<vmem>>, vector<128x128xbf16>
    %cst_14 = arith.constant dense<0.000000e+00> : vector<2x128xf32>
    %19 = tpu.matmul %17, %18, %cst_14 {dimension_numbers = #tpu.dot_dimension_numbers<[1], [0], [0], [1], [0, 0, 1, 1], [], []>} : vector<2x128xbf16>, vector<128x128xbf16>, vector<2x128xf32> -> vector<2x128xf32>
    %c0_15 = arith.constant 0 : index
    %c0_16 = arith.constant 0 : index
    %20 = vector.load %arg7[%c0_15, %c0_16] : memref<1x128xf32, #tpu.memory_space<vmem>>, vector<1x128xf32>
    %21 = vector.broadcast %20 : vector<1x128xf32> to vector<2x128xf32>
    %22 = arith.addf %19, %21 : vector<2x128xf32>
    %23 = tpu.iota {dimensions = array<i32: 1>} : vector<2x128xi32>
    %c8_i32 = arith.constant 8 : i32
    %24 = vector.broadcast %c8_i32 : i32 to vector<2x128xi32>
    %25 = arith.cmpi slt, %23, %24 : vector<2x128xi32>
    %cst_17 = arith.constant 0.000000e+00 : f32
    %26 = vector.broadcast %cst_17 : f32 to vector<2x128xf32>
    %27 = arith.select %25, %22, %26 : vector<2x128xi1>, vector<2x128xf32>
    %28 = arith.mulf %16, %16 : vector<2x128xf32>
    %cst_18 = arith.constant dense<0.000000e+00> : vector<2xf32>
    %29 = vector.multi_reduction <add>, %28, %cst_18 [1] : vector<2x128xf32> to vector<2xf32>
    %30 = vector.shape_cast %29 : vector<2xf32> to vector<2x1xf32>
    %cst_19 = arith.constant 1.000000e-30 : f32
    %31 = vector.broadcast %cst_19 : f32 to vector<2x1xf32>
    %32 = arith.maximumf %30, %31 : vector<2x1xf32>
    %33 = arith.mulf %27, %27 : vector<2x128xf32>
    %cst_20 = arith.constant dense<0.000000e+00> : vector<2xf32>
    %34 = vector.multi_reduction <add>, %33, %cst_20 [1] : vector<2x128xf32> to vector<2xf32>
    %35 = vector.shape_cast %34 : vector<2xf32> to vector<2x1xf32>
    %cst_21 = arith.constant 1.000000e-30 : f32
    %36 = vector.broadcast %cst_21 : f32 to vector<2x1xf32>
    %37 = arith.maximumf %35, %36 : vector<2x1xf32>
    %38 = math.rsqrt %32 : vector<2x1xf32>
    %39 = math.rsqrt %37 : vector<2x1xf32>
    %40 = arith.mulf %32, %38 : vector<2x1xf32>
    %41 = arith.mulf %37, %39 : vector<2x1xf32>
    %42 = arith.mulf %41, %38 : vector<2x1xf32>
    %cst_22 = arith.constant 1.000000e+00 : f32
    %43 = vector.broadcast %cst_22 : f32 to vector<2x1xf32>
    %44 = arith.mulf %43, %40 : vector<2x1xf32>
    %cst_23 = arith.constant -0.99999988 : f32
    %cst_24 = arith.constant 0.99999988 : f32
    %45 = vector.broadcast %cst_23 : f32 to vector<2x1xf32>
    %46 = arith.maximumf %45, %44 : vector<2x1xf32>
    %47 = vector.broadcast %cst_24 : f32 to vector<2x1xf32>
    %48 = arith.minimumf %47, %46 : vector<2x1xf32>
    %cst_25 = arith.constant 1.000000e+00 : f32
    %49 = vector.broadcast %cst_25 : f32 to vector<2x1xf32>
    %50 = arith.addf %49, %48 : vector<2x1xf32>
    %cst_26 = arith.constant 1.000000e+00 : f32
    %51 = vector.broadcast %cst_26 : f32 to vector<2x1xf32>
    %52 = arith.subf %51, %48 : vector<2x1xf32>
    %53 = arith.divf %50, %52 : vector<2x1xf32>
    %54 = math.log %53 : vector<2x1xf32>
    %cst_27 = arith.constant 5.000000e-01 : f32
    %55 = vector.broadcast %cst_27 : f32 to vector<2x1xf32>
    %56 = arith.mulf %55, %54 : vector<2x1xf32>
    %57 = arith.mulf %42, %56 : vector<2x1xf32>
    %58 = math.tanh %57 : vector<2x1xf32>
    %59 = math.tanh %58 : vector<2x1xf32>
    %cst_28 = arith.constant 1.000000e+00 : f32
    %60 = vector.broadcast %cst_28 : f32 to vector<2x1xf32>
    %61 = arith.divf %59, %60 : vector<2x1xf32>
    %62 = arith.mulf %61, %39 : vector<2x1xf32>
    %63 = vector.broadcast %62 : vector<2x1xf32> to vector<2x128xf32>
    %64 = arith.mulf %63, %22 : vector<2x128xf32>
    %cst_29 = arith.constant 0.000000e+00 : f32
    %65 = vector.broadcast %cst_29 : f32 to vector<2x128xf32>
    %66 = arith.maximumf %22, %65 : vector<2x128xf32>
    %67 = vector.broadcast %cst_29 : f32 to vector<2x128xf32>
    %68 = arith.subf %22, %67 : vector<2x128xf32>
    %69 = arith.cmpf one, %68, %68 : vector<2x128xf32>
    %70 = vector.broadcast %cst_29 : f32 to vector<2x128xf32>
    %71 = arith.addf %22, %70 : vector<2x128xf32>
    %72 = math.absf %68 : vector<2x128xf32>
    %cst_30 = arith.constant 0.000000e+00 : f32
    %73 = vector.broadcast %cst_30 : f32 to vector<2x128xf32>
    %74 = arith.subf %73, %72 : vector<2x128xf32>
    %75 = math.exp %74 : vector<2x128xf32>
    %76 = math.log1p %75 : vector<2x128xf32>
    %77 = arith.addf %66, %76 : vector<2x128xf32>
    %78 = arith.select %69, %71, %77 : vector<2x128xi1>, vector<2x128xf32>
    %cst_31 = arith.constant 9.99999974E-6 : f32
    %79 = vector.broadcast %cst_31 : f32 to vector<2x128xf32>
    %80 = arith.addf %78, %79 : vector<2x128xf32>
    %81 = arith.select %25, %64, %80 : vector<2x128xi1>, vector<2x128xf32>
    %c0_32 = arith.constant 0 : index
    %c0_33 = arith.constant 0 : index
    %82 = vector.load %arg8[%c0_32, %c0_33] : memref<2x128xf32, #tpu.memory_space<vmem>>, vector<2x128xf32>
    tpu.vector_store %arg8[%c0_32, %c0_33], %81 {strides = array<i32>} : memref<2x128xf32, #tpu.memory_space<vmem>>, vector<2x128xf32>,
    return
  }
  func.func @transform_0(%arg0: i32) -> (i32, i32) {
    %c0_i32 = arith.constant 0 : i32
    %c0_i32_0 = arith.constant 0 : i32
    return %arg0, %c0_i32 : i32, i32
  }
  func.func @transform_1(%arg0: i32) -> (i32, i32) {
    %c0_i32 = arith.constant 0 : i32
    %c0_i32_0 = arith.constant 0 : i32
    %c0_i32_1 = arith.constant 0 : i32
    return %c0_i32, %c0_i32_0 : i32, i32
  }
  func.func @transform_2(%arg0: i32) -> (i32, i32) {
    %c0_i32 = arith.constant 0 : i32
    %c0_i32_0 = arith.constant 0 : i32
    %c0_i32_1 = arith.constant 0 : i32
    return %c0_i32, %c0_i32_0 : i32, i32
  }
  func.func @transform_3(%arg0: i32) -> (i32, i32) {
    %c0_i32 = arith.constant 0 : i32
    %c0_i32_0 = arith.constant 0 : i32
    %c0_i32_1 = arith.constant 0 : i32
    return %c0_i32, %c0_i32_0 : i32, i32
  }
  func.func @transform_4(%arg0: i32) -> (i32, i32) {
    %c0_i32 = arith.constant 0 : i32
    %c0_i32_0 = arith.constant 0 : i32
    %c0_i32_1 = arith.constant 0 : i32
    return %c0_i32, %c0_i32_0 : i32, i32
  }
  func.func @transform_5(%arg0: i32) -> (i32, i32) {
    %c0_i32 = arith.constant 0 : i32
    %c0_i32_0 = arith.constant 0 : i32
    %c0_i32_1 = arith.constant 0 : i32
    return %c0_i32, %c0_i32_0 : i32, i32
  }
  func.func @transform_6(%arg0: i32) -> (i32, i32) {
    %c0_i32 = arith.constant 0 : i32
    %c0_i32_0 = arith.constant 0 : i32
    %c0_i32_1 = arith.constant 0 : i32
    return %c0_i32, %c0_i32_0 : i32, i32
  }
  func.func @transform_7(%arg0: i32) -> (i32, i32) {
    %c0_i32 = arith.constant 0 : i32
    %c0_i32_0 = arith.constant 0 : i32
    return %arg0, %c0_i32 : i32, i32
  }
}

</mosaic_0001>

<bundles_post_ra>
// kernel: tpu_custom_call.1
= control target key start
LH: loop header
LB: loop body
LE: loop exit
PB: predicated region body
PF: predicated region fallthrough
CT: control target
= control target key end

     0   :  { %12 = vsyncpa [#allocation3], 0  ;;  %s1731_s0 = inlined_call_operand.hbm [shape: f32[2,1024], index: 0, kind: input, shape index: {}]   ;;  %s1732_s1 = inlined_call_operand.hbm [shape: bf16[1024,128], index: 1, kind: input, shape index: {}]   ;;  %s1733_s2 = inlined_call_operand.vmem [shape: f32[1,128], index: 2, kind: input, shape index: {}]   ;;  %s1734_s3 = inlined_call_operand.hbm [shape: bf16[128,128], index: 3, kind: input, shape index: {}]   ;;  %s1735_s4 = inlined_call_operand.vmem [shape: f32[1,128], index: 4, kind: input, shape index: {}]   ;;  %s1736_s5 = inlined_call_operand.hbm [shape: bf16[128,128], index: 5, kind: input, shape index: {}]   ;;  %s1737_s6 = inlined_call_operand.vmem [shape: f32[1,128], index: 6, kind: input, shape index: {}]   ;;  %s1738_s7 = inlined_call_operand.hbm [shape: f32[2,128], index: 7, kind: output, shape index: {}]  }
   0x1   :  { %13 = vsyncpa [#allocation6], 0 }
   0x2   :  { %14 = vsyncpa [#allocation9], 0 }
   0x3   :  { %15 = vsyncpa [#allocation4], 0  ;;  %s1568_s24 = smov [#allocation5]   ;;  %s1450_s28 = scalar_lea.hbm %s1732_s1, 8192 }
   0x4   :  { %s31_s25 = sshll.u32 %s1568_s24, 4  ;;  %p1451_p0 = scmp.ne.s32.totalorder %s1732_s1, %s1450_s28  ;;  %s32_s25 = int_to_ptr.vmem [resolvable:$true] %s31_s25 }
   0x5   :  { %p1454_p1 = scmp.lt.u32.totalorder %s1450_s28, %s1732_s1 }
   0x7   :  { %p1456_p2 = pnand %p1454_p1, %p1451_p0 }
   0x9   :  { %1459 = shalt.err (!%p1456_p2)
}
   0xa   :  { %s1460_s10 = scalar_lea.vmem %s32_s25, 8192  ;;  %p1465_p4 = scmp.lt.s32.totalorder %s32_s25, %s32_s25 }
   0xb   :  { %p1461_p3 = scmp.ne.s32.totalorder %s32_s25, %s1460_s10  ;;  %p1466_p5 = scmp.lt.s32.totalorder %s1460_s10, %s1460_s10 }
   0xd   :  { %p1467_p6 = por %p1466_p5, %p1465_p4 }
   0xf   :  { %p1468_p7 = pnand %p1467_p6, %p1461_p3 }
  0x11   :  { %1471 = shalt.err (!%p1468_p7)
}
  0x12   :  { %s1569_s11 = smov 64   ;;  %s1570_s12 = smov 4  }
  0x13   :  { %37 = dma.hbm_to_vmem [thread:$0]  %s1732_s1, 8192, %s32_s25, [#allocation6], %s1569_s11, %s1569_s11, %s1570_s12  }
  0x14   :  { %s1571_s15 = smov [#allocation2]   ;;  %s1572_s17 = smov [#allocation7]  }
  0x15   :  { %s22_s16 = sshll.u32 %s1571_s15, 4  ;;  %s45_s18 = sshll.u32 %s1572_s17, 4  ;;  %s23_s16 = int_to_ptr.vmem [resolvable:$true] %s22_s16  ;;  %s46_s18 = int_to_ptr.vmem [resolvable:$true] %s45_s18 }
  0x16   :  { %s1472_s21 = scalar_lea.hbm %s1731_s0, 256 }
  0x17   :  { %p1473_p8 = scmp.ne.s32.totalorder %s1731_s0, %s1472_s21  ;;  %p1476_p9 = scmp.lt.u32.totalorder %s1472_s21, %s1731_s0 }
  0x19   :  { %p1478_p10 = pnand %p1476_p9, %p1473_p8 }
  0x1b   :  { %1481 = shalt.err (!%p1478_p10)
}
  0x1c   :  { %s1482_s1 = scalar_lea.vmem %s23_s16, 256  ;;  %p1487_p12 = scmp.lt.s32.totalorder %s23_s16, %s23_s16 }
  0x1d   :  { %p1483_p11 = scmp.ne.s32.totalorder %s23_s16, %s1482_s1  ;;  %p1488_p13 = scmp.lt.s32.totalorder %s1482_s1, %s1482_s1 }
  0x1f   :  { %p1489_p0 = por %p1488_p13, %p1487_p12 }
  0x21   :  { %p1490_p1 = pnand %p1489_p0, %p1483_p11 }
  0x23   :  { %1493 = shalt.err (!%p1490_p1)
}
  0x24   :  { %25 = dma.hbm_to_vmem [thread:$0]  %s1731_s0, 256, %s23_s16, [#allocation3]  }
  0x25   :  { %s1494_s30 = scalar_lea.hbm %s1734_s3, 1024 }
  0x26   :  { %p1495_p2 = scmp.ne.s32.totalorder %s1734_s3, %s1494_s30  ;;  %p1498_p3 = scmp.lt.u32.totalorder %s1494_s30, %s1734_s3 }
  0x28   :  { %p1500_p4 = pnand %p1498_p3, %p1495_p2 }
  0x2a   :  { %1503 = shalt.err (!%p1500_p4)
}
  0x2b   :  { %s1504_s14 = scalar_lea.vmem %s46_s18, 1024  ;;  %p1509_p6 = scmp.lt.s32.totalorder %s46_s18, %s46_s18 }
  0x2c   :  { %p1505_p5 = scmp.ne.s32.totalorder %s46_s18, %s1504_s14  ;;  %p1510_p7 = scmp.lt.s32.totalorder %s1504_s14, %s1504_s14 }
  0x2e   :  { %p1511_p8 = por %p1510_p7, %p1509_p6 }
  0x30   :  { %p1512_p9 = pnand %p1511_p8, %p1505_p5 }
  0x32   :  { %1515 = shalt.err (!%p1512_p9)
}
  0x33   :  { %51 = dma.hbm_to_vmem [thread:$0]  %s1734_s3, 1024, %s46_s18, [#allocation6], %s1569_s11, %s1569_s11, %s1570_s12  }
  0x34   :  { %s1573_s16 = smov [#allocation8]   ;;  %s1516_s21 = scalar_lea.hbm %s1736_s5, 1024 }
  0x35   :  { %s59_s17 = sshll.u32 %s1573_s16, 4  ;;  %p1517_p10 = scmp.ne.s32.totalorder %s1736_s5, %s1516_s21  ;;  %s60_s17 = int_to_ptr.vmem [resolvable:$true] %s59_s17 }
  0x36   :  { %p1520_p11 = scmp.lt.u32.totalorder %s1516_s21, %s1736_s5 }
  0x38   :  { %p1522_p12 = pnand %p1520_p11, %p1517_p10 }
  0x3a   :  { %1525 = shalt.err (!%p1522_p12)
}
  0x3b   :  { %s1526_s1 = scalar_lea.vmem %s60_s17, 1024  ;;  %p1531_p0 = scmp.lt.s32.totalorder %s60_s17, %s60_s17 }
  0x3c   :  { %p1527_p13 = scmp.ne.s32.totalorder %s60_s17, %s1526_s1  ;;  %p1532_p1 = scmp.lt.s32.totalorder %s1526_s1, %s1526_s1 }
  0x3e   :  { %p1533_p2 = por %p1532_p1, %p1531_p0 }
  0x40   :  { %p1534_p3 = pnand %p1533_p2, %p1527_p13 }
  0x42   :  { %1537 = shalt.err (!%p1534_p3)
}
  0x43   :  { %65 = dma.hbm_to_vmem [thread:$0]  %s1736_s5, 1024, %s60_s17, [#allocation9], %s1569_s11, %s1569_s11, %s1570_s12  }
  0x44   :  { %1560 = dma.done.wait [#allocation3], 256  }
  0x45   :  { %1561 = vsyncadd [#allocation3], 4294967040 }
  0x46   :  { %1562 = dma.done.wait [#allocation6], 9216  }
  0x47   :  { %1563 = vsyncadd [#allocation6], 4294958080 }
  0x48   :  { %1564 = dma.done.wait [#allocation9], 1024  }
  0x49   :  { %1565 = vsyncadd [#allocation9], 4294966272  ;;  %v1352_v0 = vld [vmem:[#allocation5 + $0x40] sm:$0xff]   ;;  %v1356_v4 = vld [vmem:[#allocation5 + $0x48] sm:$0xff]   ;;  %v1574_v22 = vmov 1983009808   ;;  %v89_v24 = vlaneseq }
  0x4a   :  { %v1353_v1 = vld [vmem:[#allocation5 + $0xc0] sm:$0xff]   ;;  %1196 = vmatprep.subr.bf16.mxu0 %v1352_v0  ;;  %v1357_v5 = vld [vmem:[#allocation5 + $0xc8] sm:$0xff]   ;;  %v1360_v8 = vld [vmem:[#allocation5 + $0x50] sm:$0xff]   ;;  %v87_v23 = vunpack.c.l.s4 %v1574_v22  ;;  %vm1576_vm0 = vmmov 0   ;;  %vm1045_vm1 = vcmask 1041408  }
  0x4b   :  { %v1354_v2 = vld [vmem:[#allocation5] sm:$0xff]   ;;  %1218 = vmatprep.subr.bf16.mxu1 %v1353_v1  ;;  %v1358_v6 = vld [vmem:[#allocation5 + $0x8] sm:$0xff]   ;;  %v1361_v9 = vld [vmem:[#allocation5 + $0xd0] sm:$0xff]   ;;  %v90_v30 = vshrl.u32 %v89_v24, 7 }
  0x4c   :  { %v1355_v3 = vld [vmem:[#allocation5 + $0x80] sm:$0xff]   ;;  %1197 = vmatpush3.bf16.msra.mxu0 %v1354_v2  ;;  %v1359_v7 = vld [vmem:[#allocation5 + $0x88] sm:$0xff]   ;;  %v1362_v10 = vld [vmem:[#allocation5 + $0x10] sm:$0xff]   ;;  %v88_v29 = vunpack.c.0.s8 %v87_v23 }
  0x4d   :  { %1219 = vmatpush3.bf16.msra.mxu1 %v1355_v3  ;;  %1198 = vmatprep.subr.bf16.mxu0 %v1356_v4  ;;  %v1363_v11 = vld [vmem:[#allocation5 + $0x90] sm:$0xff]   ;;  %v1364_v12 = vld [vmem:[#allocation5 + $0x58] sm:$0xff]   ;;  %v1368_v16 = vld [vmem:[#allocation5 + $0x60] sm:$0xff]  }
  0x4e   :  { %1220 = vmatprep.subr.bf16.mxu1 %v1357_v5  ;;  %v1365_v13 = vld [vmem:[#allocation5 + $0xd8] sm:$0xff]   ;;  %v1369_v17 = vld [vmem:[#allocation5 + $0xe0] sm:$0xff]   ;;  %v1372_v20 = vld [vmem:[#allocation5 + $0x68] sm:$0xff]   ;;  %v1676_v35 = vsub.s32 %v88_v29, %v90_v30 }
  0x4f   :  { %v1366_v14 = vld [vmem:[#allocation5 + $0x18] sm:$0xff]   ;;  %v1370_v18 = vld [vmem:[#allocation5 + $0x20] sm:$0xff]   ;;  %v1373_v21 = vld [vmem:[#allocation5 + $0xe8] sm:$0xff]  }
  0x50   :  { %1199 = vmatpush3.bf16.msra.mxu0 %v1358_v6  ;;  %v1367_v15 = vld [vmem:[#allocation5 + $0x98] sm:$0xff]   ;;  %v1371_v19 = vld [vmem:[#allocation5 + $0xa0] sm:$0xff]   ;;  %v1374_v25 = vld [vmem:[#allocation5 + $0x28] sm:$0xff]  }
  0x51   :  { %1221 = vmatpush3.bf16.msra.mxu1 %v1359_v7  ;;  %1200 = vmatprep.subr.bf16.mxu0 %v1360_v8  ;;  %v1375_v26 = vld [vmem:[#allocation5 + $0xa8] sm:$0xff]   ;;  %v1376_v27 = vld [vmem:[#allocation5 + $0x70] sm:$0xff]   ;;  %v1380_v33 = vld [vmem:[#allocation5 + $0x78] sm:$0xff]  }
  0x52   :  { %1222 = vmatprep.subr.bf16.mxu1 %v1361_v9  ;;  %v1377_v28 = vld [vmem:[#allocation5 + $0xf0] sm:$0xff]   ;;  %v1381_v34 = vld [vmem:[#allocation5 + $0xf8] sm:$0xff]   ;;  %v1385_v41 = vld [vmem:[#allocation5 + $0x140] sm:$0xff]  }
  0x53   :  { %v1378_v31 = vld [vmem:[#allocation5 + $0x30] sm:$0xff]   ;;  %v1382_v36 = vld [vmem:[#allocation5 + $0x38] sm:$0xff]   ;;  %v1386_v42 = vld [vmem:[#allocation5 + $0x1c0] sm:$0xff]  }
  0x54   :  { %1201 = vmatpush3.bf16.msra.mxu0 %v1362_v10  ;;  %v1379_v32 = vld [vmem:[#allocation5 + $0xb0] sm:$0xff]   ;;  %v1383_v37 = vld [vmem:[#allocation5 + $0xb8] sm:$0xff]   ;;  %v1387_v46 = vld [vmem:[#allocation5 + $0x100] sm:$0xff]  }
  0x55   :  { %1223 = vmatpush3.bf16.msra.mxu1 %v1363_v11  ;;  %1202 = vmatprep.subr.bf16.mxu0 %v1364_v12  ;;  %v81_v38 = vld [vmem:[#allocation2] sm:$0xff]  ;;  %v1388_v49 = vld [vmem:[#allocation5 + $0x180] sm:$0xff]   ;;  %v1389_v51 = vld [vmem:[#allocation5 + $0x148] sm:$0xff]  }
  0x56   :  { %1224 = vmatprep.subr.bf16.mxu1 %v1365_v13  ;;  %v92_v39 = vrot.slane %v81_v38, %v1676_v35  ;;  %v85_v40 = vcombine.high %v81_v38, %v81_v38  ;;  %v1390_v53 = vld [vmem:[#allocation5 + $0x1c8] sm:$0xff]   ;;  %v1393_v56 = vld [vmem:[#allocation5 + $0x150] sm:$0xff]   ;;  %v1397_v60 = vld [vmem:[#allocation5 + $0x158] sm:$0xff]  }
  0x57   :  { %v1391_v54 = vld [vmem:[#allocation5 + $0x108] sm:$0xff]   ;;  %v1394_v57 = vld [vmem:[#allocation5 + $0x1d0] sm:$0xff]   ;;  %v1398_v61 = vld [vmem:[#allocation5 + $0x1d8] sm:$0xff]  }
  0x58   :  { %1203 = vmatpush3.bf16.msra.mxu0 %v1366_v14  ;;  %v100_v43 = vcombine.high %v92_v39, %v92_v39  ;;  %v99_v44 = vrot.slane %v85_v40, %v1676_v35  ;;  %v127_v45 = vpack.c.bf16 %v92_v39, %v92_v39  ;;  %v1392_v55 = vld [vmem:[#allocation5 + $0x188] sm:$0xff]   ;;  %v1395_v58 = vld [vmem:[#allocation5 + $0x110] sm:$0xff]   ;;  %v1399_v62 = vld [vmem:[#allocation5 + $0x118] sm:$0xff]  }
  0x59   :  { %1225 = vmatpush3.bf16.msra.mxu1 %v1367_v15  ;;  %1204 = vmatprep.subr.bf16.mxu0 %v1368_v16  ;;  %v1396_v59 = vld [vmem:[#allocation5 + $0x190] sm:$0xff]   ;;  %v1400_v63 = vld [vmem:[#allocation5 + $0x198] sm:$0xff]   ;;  %v1401_v0 = vld [vmem:[#allocation5 + $0x160] sm:$0xff]  }
  0x5a   :  { %1226 = vmatprep.subr.bf16.mxu1 %v1369_v17  ;;  %v128_v47 = vpack.c.bf16 %v100_v43, %v100_v43  ;;  %v101_v48 = vcombine.high %v99_v44, %v99_v44  ;;  %v129_v50 = vpack.c.bf16 %v99_v44, %v99_v44  ;;  %v1402_v1 = vld [vmem:[#allocation5 + $0x1e0] sm:$0xff]   ;;  %v1405_v4 = vld [vmem:[#allocation5 + $0x168] sm:$0xff]   ;;  %v1409_v8 = vld [vmem:[#allocation5 + $0x170] sm:$0xff]  }
  0x5b   :  { %v1403_v2 = vld [vmem:[#allocation5 + $0x120] sm:$0xff]   ;;  %v1406_v5 = vld [vmem:[#allocation5 + $0x1e8] sm:$0xff]   ;;  %v1410_v9 = vld [vmem:[#allocation5 + $0x1f0] sm:$0xff]  }
  0x5c   :  { %1205 = vmatpush3.bf16.msra.mxu0 %v1370_v18  ;;  %686 = vmatprep.mubr.bf16.mxu0 %v128_v47  ;;  %v130_v52 = vpack.c.bf16 %v101_v48, %v101_v48  ;;  %v1404_v3 = vld [vmem:[#allocation5 + $0x1a0] sm:$0xff]   ;;  %v1407_v6 = vld [vmem:[#allocation5 + $0x128] sm:$0xff]   ;;  %v1411_v10 = vld [vmem:[#allocation5 + $0x130] sm:$0xff]  }
  0x5d   :  { %1227 = vmatpush3.bf16.msra.mxu1 %v1371_v19  ;;  %1206 = vmatprep.subr.bf16.mxu0 %v1372_v20  ;;  %v1408_v7 = vld [vmem:[#allocation5 + $0x1a8] sm:$0xff]   ;;  %v1412_v11 = vld [vmem:[#allocation5 + $0x1b0] sm:$0xff]   ;;  %v1413_v12 = vld [vmem:[#allocation5 + $0x178] sm:$0xff]  }
  0x5e   :  { %1228 = vmatprep.subr.bf16.mxu1 %v1373_v21  ;;  %726 = vmatprep.mubr.bf16.mxu1 %v130_v52  ;;  %v1414_v13 = vld [vmem:[#allocation5 + $0x1f8] sm:$0xff]   ;;  %v1419_v29 = vld [vmem:[#allocation7 + $0x8] sm:$0xff]   ;;  %v1420_v30 = vld [vmem:[#allocation7 + $0x10] sm:$0xff]  }
  0x5f   :  { %v1415_v14 = vld [vmem:[#allocation5 + $0x138] sm:$0xff]   ;;  %v1428_v38 = vld [vmem:[#allocation8 + $0x10] sm:$0xff]   ;;  %v1430_v40 = vld [vmem:[#allocation8 + $0x20] sm:$0xff]  }
  0x60   :  { %1207 = vmatpush3.bf16.msra.mxu0 %v1374_v25  ;;  %v82_v15 = vld [vmem:[#allocation2 + $0x8] sm:$0xff]  ;;  %v1112_v43 = vld [vmem:[%s1733_s2] ss:$0 sm:$0xff] }
  0x61   :  { %1229 = vmatpush3.bf16.msra.mxu1 %v1375_v26  ;;  %1208 = vmatprep.subr.bf16.mxu0 %v1376_v27  ;;  %v1416_v16 = vld [vmem:[#allocation5 + $0x1b8] sm:$0xff]   ;;  %v109_v17 = vrot.slane %v82_v15, %v1676_v35  ;;  %v102_v18 = vcombine.high %v82_v15, %v82_v15  ;;  %v1418_v27 = vld [vmem:[#allocation7] sm:$0xff]  }
  0x62   :  { %1230 = vmatprep.subr.bf16.mxu1 %v1377_v28  ;;  %v1575_v28 = vmov 0.0   ;;  %v1429_v39 = vld [vmem:[#allocation8 + $0x18] sm:$0xff]  }
  0x63   :  { %v117_v19 = vcombine.high %v109_v17, %v109_v17  ;;  %v116_v20 = vrot.slane %v102_v18, %v1676_v35  ;;  %v131_v21 = vpack.c.bf16 %v109_v17, %v109_v17  ;;  %v1425_v35 = vld [vmem:[#allocation7 + $0x38] sm:$0xff]   ;;  %v1708_v17 = vand.u32 127, %v89_v24  ;;  %v1186_v18 = vld [vmem:[%s1737_s6] ss:$0 sm:$0xff] }
  0x64   :  { %1209 = vmatpush3.bf16.msra.mxu0 %v1378_v31  ;;  %v1421_v31 = vld [vmem:[#allocation7 + $0x18] sm:$0xff]  }
  0x65   :  { %1231 = vmatpush3.bf16.msra.mxu1 %v1379_v32  ;;  %1210 = vmatprep.subr.bf16.mxu0 %v1380_v33  ;;  %v132_v22 = vpack.c.bf16 %v117_v19, %v117_v19  ;;  %v118_v23 = vcombine.high %v116_v20, %v116_v20  ;;  %v133_v25 = vpack.c.bf16 %v116_v20, %v116_v20  ;;  %v1422_v32 = vld [vmem:[#allocation7 + $0x20] sm:$0xff]   ;;  %v1423_v33 = vld [vmem:[#allocation7 + $0x28] sm:$0xff]   ;;  %vm1042_vm2 = vcmp.lt.s32.totalorder %v1708_v17, 8 }
  0x66   :  { %1232 = vmatprep.subr.bf16.mxu1 %v1381_v34  ;;  %v1424_v34 = vld [vmem:[#allocation7 + $0x30] sm:$0xff]  }
  0x67   :  { %v134_v26 = vpack.c.bf16 %v118_v23, %v118_v23 }
  0x68   :  { %1211 = vmatpush3.bf16.msra.mxu0 %v1382_v36  ;;  %v1426_v36 = vld [vmem:[#allocation8] sm:$0xff]  }
  0x69   :  { %1233 = vmatpush3.bf16.msra.mxu1 %v1383_v37  ;;  %1240 = vmatprep.subr.bf16.mxu0 %v1385_v41  ;;  %v1427_v37 = vld [vmem:[#allocation8 + $0x8] sm:$0xff]  }
  0x6a   :  { %1262 = vmatprep.subr.bf16.mxu1 %v1386_v42  ;;  %v1431_v41 = vld [vmem:[#allocation8 + $0x28] sm:$0xff]  }
  0x6b   :  { %687 = vmatmul.mubr.bf16.vlgmr.msra.gmra.mrb[0].mxu0 %v127_v45 }
  0x6c   :  { %1241 = vmatpush3.bf16.msra.mxu0 %v1387_v46  ;;  %727 = vmatmul.mubr.bf16.vlgmr.msra.gmra.mrb[0].mxu1 %v129_v50 }
  0x6d   :  { %1242 = vmatprep.subr.bf16.mxu0 %v1389_v51  ;;  %1263 = vmatpush3.bf16.msra.mxu1 %v1388_v49 }
  0x6e   :  { %1264 = vmatprep.subr.bf16.mxu1 %v1390_v53  ;;  %766 = vmatprep.mubr.bf16.mxu0 %v132_v22 }
  0x6f   :  { %806 = vmatprep.mubr.bf16.mxu1 %v134_v26 }
  0x70   :  { %1243 = vmatpush3.bf16.msra.mxu0 %v1391_v54 }
  0x71   :  { %1244 = vmatprep.subr.bf16.mxu0 %v1393_v56  ;;  %1265 = vmatpush3.bf16.msra.mxu1 %v1392_v55 }
  0x72   :  { %1266 = vmatprep.subr.bf16.mxu1 %v1394_v57 }
  0x74   :  { %1245 = vmatpush3.bf16.msra.mxu0 %v1395_v58 }
  0x75   :  { %1246 = vmatprep.subr.bf16.mxu0 %v1397_v60  ;;  %1267 = vmatpush3.bf16.msra.mxu1 %v1396_v59 }
  0x76   :  { %1268 = vmatprep.subr.bf16.mxu1 %v1398_v61 }
  0x78   :  { %1247 = vmatpush3.bf16.msra.mxu0 %v1399_v62 }
  0x79   :  { %1248 = vmatprep.subr.bf16.mxu0 %v1401_v0  ;;  %1269 = vmatpush3.bf16.msra.mxu1 %v1400_v63 }
  0x7a   :  { %1270 = vmatprep.subr.bf16.mxu1 %v1402_v1 }
  0x7c   :  { %1249 = vmatpush3.bf16.msra.mxu0 %v1403_v2 }
  0x7d   :  { %1250 = vmatprep.subr.bf16.mxu0 %v1405_v4  ;;  %1271 = vmatpush3.bf16.msra.mxu1 %v1404_v3 }
  0x7e   :  { %1272 = vmatprep.subr.bf16.mxu1 %v1406_v5  ;;  %v1432_v5 = vld [vmem:[#allocation8 + $0x30] sm:$0xff]  }
  0x80   :  { %1251 = vmatpush3.bf16.msra.mxu0 %v1407_v6  ;;  %v1433_v6 = vld [vmem:[#allocation8 + $0x38] sm:$0xff]  }
  0x81   :  { %1252 = vmatprep.subr.bf16.mxu0 %v1409_v8  ;;  %1273 = vmatpush3.bf16.msra.mxu1 %v1408_v7  ;;  %v1177_v7 = vld [vmem:[%s1735_s4] ss:$0 sm:$0xff]  ;;  %s1577_s4 = smov [#allocation10]  }
  0x82   :  { %1274 = vmatprep.subr.bf16.mxu1 %v1410_v9  ;;  %s1101_s6 = sshll.u32 %s1577_s4, 4  ;;  %s1102_s6 = int_to_ptr.vmem [resolvable:$true] %s1101_s6 }
  0x83   :  { %s1538_s28 = scalar_lea.vmem %s1102_s6, 32  ;;  %p1543_p5 = scmp.lt.s32.totalorder %s1102_s6, %s1102_s6 }
  0x84   :  { %1253 = vmatpush3.bf16.msra.mxu0 %v1411_v10  ;;  %p1539_p4 = scmp.ne.s32.totalorder %s1102_s6, %s1538_s28  ;;  %p1544_p6 = scmp.lt.s32.totalorder %s1538_s28, %s1538_s28 }
  0x85   :  { %1254 = vmatprep.subr.bf16.mxu0 %v1413_v12  ;;  %1275 = vmatpush3.bf16.msra.mxu1 %v1412_v11 }
  0x86   :  { %1276 = vmatprep.subr.bf16.mxu1 %v1414_v13  ;;  %p1545_p7 = por %p1544_p6, %p1543_p5 }
  0x88   :  { %1255 = vmatpush3.bf16.msra.mxu0 %v1415_v14  ;;  %p1546_p8 = pnand %p1545_p7, %p1539_p4 }
  0x89   :  { %1277 = vmatpush3.bf16.msra.mxu1 %v1416_v16  ;;  %1302 = vmatprep.subr.bf16.mxu0 %v1575_v28 }
  0x8a   :  { %1322 = vmatprep.subr.bf16.mxu1 %v1575_v28 }
  0x8b   :  { %767 = vmatmul.mubr.bf16.vlgmr.msra.gmra.mrb[4].mxu0 %v131_v21 }
  0x8c   :  { %807 = vmatmul.mubr.bf16.vlgmr.msra.gmra.mrb[4].mxu1 %v133_v25  ;;  %1303 = vmatpush3.bf16.msra.mxu0 %v1418_v27 }
  0x8d   :  { %1304 = vmatprep.subr.bf16.mxu0 %v1575_v28  ;;  %1318 = vmatprep.mubr.msk.bf16.mxu0 %vm1576_vm0, %v1575_v28 }
  0x8e   :  { %1338 = vmatprep.mubr.msk.bf16.mxu1 %vm1576_vm0, %v1575_v28  ;;  %1323 = vmatpush3.bf16.msra.mxu1 %v1426_v36 }
  0x8f   :  { %1324 = vmatprep.subr.bf16.mxu1 %v1575_v28 }
  0x90   :  { %1305 = vmatpush3.bf16.msra.mxu0 %v1419_v29 }
  0x91   :  { %1306 = vmatprep.subr.bf16.mxu0 %v1575_v28 }
  0x92   :  { %1325 = vmatpush3.bf16.msra.mxu1 %v1427_v37 }
  0x93   :  { %1326 = vmatprep.subr.bf16.mxu1 %v1575_v28 }
  0x94   :  { %1307 = vmatpush3.bf16.msra.mxu0 %v1420_v30 }
  0x95   :  { %1308 = vmatprep.subr.bf16.mxu0 %v1575_v28 }
  0x96   :  { %1327 = vmatpush3.bf16.msra.mxu1 %v1428_v38 }
  0x97   :  { %1328 = vmatprep.subr.bf16.mxu1 %v1575_v28 }
  0x98   :  { %1309 = vmatpush3.bf16.msra.mxu0 %v1421_v31 }
  0x99   :  { %1310 = vmatprep.subr.bf16.mxu0 %v1575_v28 }
  0x9a   :  { %1329 = vmatpush3.bf16.msra.mxu1 %v1429_v39 }
  0x9b   :  { %1330 = vmatprep.subr.bf16.mxu1 %v1575_v28 }
  0x9c   :  { %1311 = vmatpush3.bf16.msra.mxu0 %v1422_v32 }
  0x9d   :  { %1312 = vmatprep.subr.bf16.mxu0 %v1575_v28 }
  0x9e   :  { %1331 = vmatpush3.bf16.msra.mxu1 %v1430_v40 }
  0x9f   :  { %1332 = vmatprep.subr.bf16.mxu1 %v1575_v28 }
  0xa0   :  { %1313 = vmatpush3.bf16.msra.mxu0 %v1423_v33 }
  0xa1   :  { %1314 = vmatprep.subr.bf16.mxu0 %v1575_v28 }
  0xa2   :  { %1333 = vmatpush3.bf16.msra.mxu1 %v1431_v41 }
  0xa3   :  { %1334 = vmatprep.subr.bf16.mxu1 %v1575_v28 }
  0xa4   :  { %1315 = vmatpush3.bf16.msra.mxu0 %v1424_v34 }
  0xa5   :  { %1316 = vmatprep.subr.bf16.mxu0 %v1575_v28 }
  0xa6   :  { %1335 = vmatpush3.bf16.msra.mxu1 %v1432_v5 }
  0xa7   :  { %1336 = vmatprep.subr.bf16.mxu1 %v1575_v28 }
  0xa8   :  { %1317 = vmatpush3.bf16.msra.mxu0 %v1425_v35 }
  0xaa   :  { %1337 = vmatpush3.bf16.msra.mxu1 %v1433_v6 }
 0x13e   :  { %v1212_v42 = vpop.f32.mrb[0].mxu0 }
 0x13f   :  { %v1213_v44 = vpop.f32.mrb[1].mxu0  ;;  %v1234_v45 = vpop.f32.mrb[0].mxu1 }
 0x140   :  { %v1214_v46 = vadd.f32 %v1213_v44, %v1212_v42  ;;  %v1215_v47 = vpop.f32.mrb[2].mxu0  ;;  %v1235_v48 = vpop.f32.mrb[1].mxu1 }
 0x141   :  { %v1216_v49 = vpop.f32.mrb[3].mxu0  ;;  %v1236_v51 = vadd.f32 %v1235_v48, %v1234_v45  ;;  %v1237_v52 = vpop.f32.mrb[2].mxu1 }
 0x142   :  { %v689_v50 = vadd.f32 %v1214_v46, %v1112_v43  ;;  %v1238_v53 = vpop.f32.mrb[3].mxu1 }
 0x144   :  { %v729_v54 = vadd.f32 %v1236_v51, %v689_v50 }
 0x15e   :  { %v1256_v55 = vpop.f32.mrb[4].mxu0 }
 0x15f   :  { %v1257_v56 = vpop.f32.mrb[5].mxu0  ;;  %v1278_v57 = vpop.f32.mrb[4].mxu1 }
 0x160   :  { %v1258_v58 = vadd.f32 %v1257_v56, %v1256_v55  ;;  %v1259_v59 = vpop.f32.mrb[6].mxu0  ;;  %v1279_v60 = vpop.f32.mrb[5].mxu1 }
 0x161   :  { %v1260_v61 = vpop.f32.mrb[7].mxu0  ;;  %v1280_v63 = vadd.f32 %v1279_v60, %v1278_v57  ;;  %v1281_v0 = vpop.f32.mrb[6].mxu1 }
 0x162   :  { %v769_v62 = vadd.f32 %v1258_v58, %v729_v54  ;;  %v1282_v1 = vpop.f32.mrb[7].mxu1 }
 0x164   :  { %v809_v2 = vadd.f32 %v1280_v63, %v769_v62 }
 0x166   :  { %v814_v3 = vmax.f32 %v809_v2, 0.0 }
 0x168   :  { %v815_v4 = vpack.c.bf16 %v814_v3, %v814_v3 }
 0x16a   :  { %1319 = vmatmul.mubr.bf16.vlgmr.msra.gmra.mrb[8].mxu0 %v815_v4 }
 0x23d   :  { %v921_v8 = vpop.f32.mrb[8].mxu0 }
 0x23e   :  { %v922_v9 = vadd.f32 %v1177_v7, %v921_v8  ;;  %v1320_v10 = vpop.f32.mrb[9].mxu0 }
 0x23f   :  { %v924_v11 = vpop.f32.mrb[10].mxu0 }
 0x240   :  { %v927_v12 = vmax.f32 %v922_v9, 0.0  ;;  %v1321_v13 = vpop.f32.mrb[11].mxu0 }
 0x242   :  { %v928_v14 = vpack.c.bf16 %v927_v12, %v927_v12  ;;  %v1044_v15 = vmul.f32 %v927_v12, %v927_v12 }
 0x244   :  { %1339 = vmatmul.mubr.bf16.vlgmr.msra.gmra.mrb[8].mxu1 %v928_v14  ;;  %v1046_v16 = vsel %vm1045_vm1, %v1044_v15, 0.0 }
 0x245   :  { %1047 = vadd.xlane.f32.xlu0 %v1046_v16 }
 0x2d2   :  { %v1048_v24 = vpop.xlane.xlu0 %1047 }
 0x2d3   :  { %v1049_v28 = vmax.f32 %v1048_v24, 1e-30 }
 0x2d5   :  { %1434 = vrsqrt.f32 %v1049_v28 }
 0x2df   :  { %v1435_v29 = vpop.eup %1434 }
 0x2e0   :  { %v1057_v30 = vmul.f32 %v1435_v29, %v1049_v28 }
 0x2e2   :  { %v1195_v31 = vclamps-f32 %v1057_v30, 0.9999999 }
 0x2e4   :  { %v1063_v32 = vsub.f32 1.0, %v1195_v31  ;;  %v1062_v36 = vadd.f32 1.0, %v1195_v31 }
 0x2e6   :  { %1436 = vrcp.f32 %v1063_v32 }
 0x2f0   :  { %v1437_v34 = vpop.eup %1436 }
 0x2f1   :  { %v1065_v37 = vmul.f32 %v1437_v34, %v1062_v36 }
 0x2f3   :  { %1438 = vlog2.f32 %v1065_v37 }
 0x2fd   :  { %v1439_v41 = vpop.eup %1438 }
 0x2fe   :  { %v1067_v43 = vmul.f32 0.6931472, %v1439_v41 }
 0x300   :  { %v1068_v47 = vmul.f32 0.5, %v1067_v43 }
 0x317   :  { %v1034_v19 = vpop.f32.mrb[8].mxu1 }
 0x318   :  { %v1035_v20 = vadd.f32 %v1186_v18, %v1034_v19  ;;  %v1340_v21 = vpop.f32.mrb[9].mxu1 }
 0x319   :  { %v1037_v22 = vpop.f32.mrb[10].mxu1 }
 0x31a   :  { %v1341_v23 = vpop.f32.mrb[11].mxu1  ;;  %v1043_v25 = vsel %vm1042_vm2, %v1035_v20, 0.0  ;;  %v1077_v33 = vand.u32 2147483647, %v1035_v20  ;;  %v1074_v58 = vmax.f32 %v1035_v20, 0.0  ;;  %vm1075_vm4 = vcmp.ne.f32.partialorder %v1035_v20, %v1035_v20 }
 0x31b   :  { %v1050_v26 = vmul.f32 %v1043_v25, %v1043_v25 }
 0x31c   :  { %v1078_v35 = vsub.f32 0.0, %v1077_v33 }
 0x31d   :  { %v1051_v27 = vsel %vm1045_vm1, %v1050_v26, 0.0 }
 0x31e   :  { %1052 = vadd.xlane.f32.xlu0 %v1051_v27  ;;  %v1079_v38 = vmul.f32 1.442695, %v1078_v35 }
 0x320   :  { %1440 = vpow2.f32 %v1079_v38 }
 0x32a   :  { %v1441_v42 = vpop.eup %1440 }
 0x32b   :  { %v1081_v45 = vadd.f32 1.0, %v1441_v42  ;;  %v1084_v50 = vmul.f32 -0.5, %v1441_v42  ;;  %v1087_v53 = vand.u32 2147483647, %v1441_v42 }
 0x32d   :  { %v1085_v52 = vadd.f32 1.0, %v1084_v50  ;;  %vm1088_vm3 = vcmp.lt.f32.partialorder %v1087_v53, 0.0004427343 }
 0x32f   :  { %v1086_v56 = vmul.f32 %v1441_v42, %v1085_v52 }
 0x3ab   :  { %v1053_v39 = vpop.xlane.xlu0 %1052 }
 0x3ac   :  { %v1054_v40 = vmax.f32 %v1053_v39, 1e-30 }
 0x3ae   :  { %1442 = vrsqrt.f32 %v1054_v40 }
 0x3af   :  { %1444 = vlog2.f32 %v1081_v45 }
 0x3b8   :  { %v1443_v44 = vpop.eup %1442 }
 0x3b9   :  { %v1058_v46 = vmul.f32 %v1443_v44, %v1054_v40  ;;  %v1445_v51 = vpop.eup %1444 }
 0x3ba   :  { %v1083_v55 = vmul.f32 0.6931472, %v1445_v51 }
 0x3bb   :  { %v1059_v48 = vmul.f32 %v1435_v29, %v1058_v46 }
 0x3bc   :  { %v1089_v57 = vsel %vm1088_vm3, %v1086_v56, %v1083_v55 }
 0x3bd   :  { %v1069_v49 = vmul.f32 %v1068_v47, %v1059_v48  ;;  %v1090_v59 = vadd.f32 %v1089_v57, %v1074_v58 }
 0x3bf   :  { %1446 = vtanh.f32 %v1069_v49  ;;  %v1091_v61 = vsel %vm1075_vm4, %v1035_v20, %v1090_v59 }
 0x3c0   :  { %v1092_v0 = vadd.f32 1e-05, %v1091_v61 }
 0x3c9   :  { %v1447_v54 = vpop.eup %1446 }
 0x3ca   :  { %1448 = vtanh.f32 %v1447_v54 }
 0x3d4   :  { %v1449_v60 = vpop.eup %1448 }
 0x3d5   :  { %v1072_v62 = vmul.f32 %v1449_v60, %v1443_v44 }
 0x3d7   :  { %v1073_v63 = vmul.f32 %v1072_v62, %v1035_v20 }
 0x3d9   :  { %v1093_v1 = vsel %vm1042_vm2, %v1073_v63, %v1092_v0 }
 0x3da   :  { %1094 = vst [vmem:[#allocation10] sm:$0x3] %v1093_v1 }
 0x3db   :  { %1549 = shalt.err (!%p1546_p8)
}
 0x3dc   :  { %s1550_s8 = scalar_lea.hbm %s1738_s7, 32 }
 0x3dd   :  { %p1551_p9 = scmp.ne.s32.totalorder %s1738_s7, %s1550_s8  ;;  %p1554_p10 = scmp.lt.u32.totalorder %s1550_s8, %s1738_s7 }
 0x3df   :  { %p1556_p11 = pnand %p1554_p10, %p1551_p9 }
 0x3e1   :  { %1559 = shalt.err (!%p1556_p11)
}
 0x3e2   :  { %1104 = dma.vmem_to_hbm [thread:$0]  %s1102_s6, 32, %s1738_s7, [#allocation4]  }
 0x3e3   :  { %1566 = dma.done.wait [#allocation4], 32  }
 0x3e4   :  { %1567 = vsyncadd [#allocation4], 4294967264 }
 0x3e5   :  { %1108 = vsyncpa [#allocation3], 1 }
 0x3e6   :  { %1109 = vsyncpa [#allocation6], 1 }
 0x3e7   :  { %1110 = vsyncpa [#allocation9], 1 }
 0x3e8   :  { %1111 = vsyncpa [#allocation4], 1 }

</bundles_post_ra>
